<compile_context>
chip_gen: v7x
topology: tpu7x:2x2x1
jax: 0.10.0
libtpu: 0.0.40
codegen_flags: <defaults>
</compile_context>

<pallas_src>
import functools

import jax
import jax.numpy as jnp
from jax.experimental import pallas as pl
from jax.experimental.pallas import tpu as pltpu


def _round_up(x, m):
    return (x + m - 1) // m * m


def _choose_tiling(B, E, H, block_b):
    """Pick (TB, B_pad, n_tiles): TB multiple of 8, minimal padding, VMEM-safe."""
    # Double-buffered f32 bytes per batch row (input tile + both output tiles).
    row_bytes = (3 * E + H + 1) * 4 * 2
    vmem_cap_rows = max(8, ((12 << 20) // row_bytes) // 8 * 8)
    tb_target = max(8, min(int(block_b), vmem_cap_rows))
    n_tiles = pl.cdiv(B, tb_target)
    if B >= 16:
        # Keep >= 2 grid steps so the "parallel" batch axis can shard across
        # both TensorCores on v7x (harmless on v5e/v6e).
        n_tiles = max(n_tiles, 2)
    TB = _round_up(pl.cdiv(B, n_tiles), 8)
    return TB, TB * n_tiles, n_tiles


def pnn_kernel(xw_ref, w1_ref, b1_ref, w2_ref, b2_ref, h_ref, p_ref, *, embed_dim):
    """One batch tile: pair products + linear1 + ReLU + linear2."""
    E = embed_dim
    xw = xw_ref[...]                                   # (TB, 3E) f32
    x1 = xw[:, 0:E]
    x2 = xw[:, E:2 * E]
    x3 = xw[:, 2 * E:3 * E]

    # Pairwise inner products for pairs (0,1), (0,2), (1,2) -- matches the
    # row/col loop order in the PyTorch forward.
    ip12 = jnp.sum(x1 * x2, axis=-1, keepdims=True)    # (TB, 1)
    ip13 = jnp.sum(x1 * x3, axis=-1, keepdims=True)
    ip23 = jnp.sum(x2 * x3, axis=-1, keepdims=True)

    # Fold the ip columns into the MXU operand: one (TB, 3E+3) x (3E+3, H)
    # matmul against the whole VMEM-resident W1. K is padded to 128 lanes in
    # the MXU, so the 3 extra columns cost nothing and the rank-1 VPU updates
    # of the previous version disappear.
    l = jnp.concatenate([xw, ip12, ip13, ip23], axis=-1)          # (TB, 3E+3)
    z = jnp.dot(l, w1_ref[...], preferred_element_type=jnp.float32)
    z = z + b1_ref[...]                                           # (1, H) bcast

    h = jnp.maximum(z, 0.0)                            # ReLU
    # nn.Dropout(p=keep_prob) is identity in eval mode; not applied.
    # TODO(synk): training-mode dropout parity is not provided.
    h_ref[...] = h

    # linear2 (H -> 1): VPU multiply + lane reduction instead of an N=1 matmul.
    p_ref[...] = jnp.sum(h * w2_ref[...], axis=-1, keepdims=True) + b2_ref[0]


@functools.partial(jax.jit, static_argnames=("block_b",))
def pnn_forward(inputs, w1, b1, w2, b2, *, block_b=512):
    """inputs: list of 3 arrays (B, E). w1: (3E+3, H), b1: (H,), w2: (H, 1), b2: (1,).

    Returns (h, p) matching the PyTorch module: h (B, H), p (B,).
    """
    x1, x2, x3 = (x.astype(jnp.float32) for x in inputs)
    B, E = x1.shape
    in_features, H = w1.shape
    assert in_features == 3 * E + 3, "linear1 in-features must be 3*embed_dim + 3"

    # Single wrapper-side concat (one XLA op) -> one lane-dense input stream.
    xw = jnp.concatenate([x1, x2, x3], axis=1)                    # (B, 3E)

    TB, B_pad, n_tiles = _choose_tiling(B, E, H, block_b)
    if B_pad != B:
        xw = jnp.pad(xw, ((0, B_pad - B), (0, 0)))

    x_spec = pl.BlockSpec((TB, 3 * E), lambda i: (i, 0))
    resident = lambda shape: pl.BlockSpec(shape, lambda i: (0, 0))  # weights stay put

    kernel = functools.partial(pnn_kernel, embed_dim=E)

    h, p2d = pl.pallas_call(
        kernel,
        out_shape=(jax.ShapeDtypeStruct((B_pad, H), jnp.float32),
                   jax.ShapeDtypeStruct((B_pad, 1), jnp.float32)),
        grid=(n_tiles,),
        in_specs=[x_spec,
                  resident((in_features, H)),               # w1 (whole, resident)
                  resident((1, H)),                         # b1
                  resident((1, H)),                         # w2 as a row
                  pl.BlockSpec(memory_space=pltpu.MemorySpace.SMEM)],  # b2 scalar
        out_specs=(pl.BlockSpec((TB, H), lambda i: (i, 0)),
                   pl.BlockSpec((TB, 1), lambda i: (i, 0))),
        compiler_params=pltpu.CompilerParams(
            dimension_semantics=("parallel",)),
    )(xw,
      w1.astype(jnp.float32),
      b1.reshape(1, H).astype(jnp.float32),
      w2.reshape(1, H).astype(jnp.float32),          # (H,1) -> (1,H), same flat order
      b2.reshape(1).astype(jnp.float32))

    return h[:B], p2d[:B, 0]


def pnn_reference(inputs, w1, b1, w2, b2, embed_dim):
    """Pure-JAX transcription of the PyTorch forward (for verification)."""
    num_inputs = len(inputs)
    xw = jnp.concatenate(inputs, axis=1)                       # (B, 3E)
    xw3d = xw.reshape(-1, num_inputs, embed_dim)               # (B, 3, E)
    row, col = [], []
    for i in range(num_inputs - 1):
        for j in range(i + 1, num_inputs):
            row.append(i)
            col.append(j)
    p = xw3d[:, jnp.array(row), :]                             # (B, 3, E)
    q = xw3d[:, jnp.array(col), :]                             # (B, 3, E)
    ip = jnp.sum(p * q, axis=-1)                               # (B, 3)
    l = jnp.concatenate([xw, ip], axis=1)                      # (B, 3E+3)
    h = jnp.maximum(l @ w1 + b1, 0.0)                          # (B, H)
    pred = (h @ w2 + b2).reshape(-1)                           # (B,)
    return h, pred


if __name__ == "__main__":
    # Small demo shapes; H=128 keeps the hidden output store lane-dense and
    # B=300 exercises the padding-aware tiling (TB=152, grid=2, B_pad=304).
    B, E, H = 300, 8, 128
    num_inputs = 3
    in_features = num_inputs * E + 3

    key = jax.random.PRNGKey(0)
    k_x1, k_x2, k_x3, k_w1, k_b1, k_w2, k_b2 = jax.random.split(key, 7)

    # Deterministic "nn.Linear"-style init (uniform in +-1/sqrt(fan_in)).
    bound1 = 1.0 / jnp.sqrt(jnp.float32(in_features))
    bound2 = 1.0 / jnp.sqrt(jnp.float32(H))
    w1 = jax.random.uniform(k_w1, (in_features, H), jnp.float32, -bound1, bound1)
    b1 = jax.random.uniform(k_b1, (H,), jnp.float32, -bound1, bound1)
    w2 = jax.random.uniform(k_w2, (H, 1), jnp.float32, -bound2, bound2)
    b2 = jax.random.uniform(k_b2, (1,), jnp.float32, -bound2, bound2)

    inputs = [
        jax.random.normal(k_x1, (B, E), jnp.float32),
        jax.random.normal(k_x2, (B, E), jnp.float32),
        jax.random.normal(k_x3, (B, E), jnp.float32),
    ]

    h, p = pnn_forward(inputs, w1, b1, w2, b2)
    jax.block_until_ready((h, p))

    h_ref, p_ref = pnn_reference(inputs, w1, b1, w2, b2, E)
    assert h.shape == (B, H) and p.shape == (B,)
    assert jnp.allclose(h, h_ref, atol=1e-5, rtol=1e-5), "hidden mismatch"
    assert jnp.allclose(p, p_ref, atol=1e-5, rtol=1e-5), "prediction mismatch"

    print("KERNEL_OK")
</pallas_src>

<mosaic_0001>
module attributes {stable_mosaic.version = 11 : i64} {
  func.func @pnn_kernel(%arg0: i32, %arg1: memref<152x24xf32, #tpu.memory_space<vmem>>, %arg2: memref<27x128xf32, #tpu.memory_space<vmem>>, %arg3: memref<1x128xf32, #tpu.memory_space<vmem>>, %arg4: memref<1x128xf32, #tpu.memory_space<vmem>>, %arg5: memref<1xf32, #tpu.memory_space<smem>>, %arg6: memref<152x128xf32, #tpu.memory_space<vmem>>, %arg7: memref<152x1xf32, #tpu.memory_space<vmem>>) attributes {dimension_semantics = [#tpu.dimension_semantics<parallel>], iteration_bounds = array<i64: 2>, scalar_prefetch = 0 : i64, scratch_operands = 0 : i64, tpu.core_type = #tpu.core_type<tc>, window_params = [{transform_indices = @transform_0, window_bounds = array<i64: 152, 24>}, {pipeline_mode = #tpu.pipeline_mode<synchronous>, transform_indices = @transform_1, window_bounds = array<i64: 27, 128>}, {pipeline_mode = #tpu.pipeline_mode<synchronous>, transform_indices = @transform_2, window_bounds = array<i64: 1, 128>}, {pipeline_mode = #tpu.pipeline_mode<synchronous>, transform_indices = @transform_3, window_bounds = array<i64: 1, 128>}, {transform_indices = @transform_4, window_bounds = array<i64: 1>}, {transform_indices = @transform_5, window_bounds = array<i64: 152, 128>}, {transform_indices = @transform_6, window_bounds = array<i64: 152, 1>}]} {
    %c0 = arith.constant 0 : index
    %c0_0 = arith.constant 0 : index
    %0 = vector.load %arg1[%c0, %c0_0] : memref<152x24xf32, #tpu.memory_space<vmem>>, vector<152x24xf32>
    %1 = vector.extract_strided_slice %0 {offsets = [0, 0], sizes = [152, 8], strides = [1, 1]} : vector<152x24xf32> to vector<152x8xf32>
    %2 = vector.extract_strided_slice %0 {offsets = [0, 8], sizes = [152, 8], strides = [1, 1]} : vector<152x24xf32> to vector<152x8xf32>
    %3 = vector.extract_strided_slice %0 {offsets = [0, 16], sizes = [152, 8], strides = [1, 1]} : vector<152x24xf32> to vector<152x8xf32>
    %4 = arith.mulf %1, %2 : vector<152x8xf32>
    %cst = arith.constant dense<0.000000e+00> : vector<152xf32>
    %5 = vector.multi_reduction <add>, %4, %cst [1] : vector<152x8xf32> to vector<152xf32>
    %6 = vector.shape_cast %5 : vector<152xf32> to vector<152x1xf32>
    %7 = arith.mulf %1, %3 : vector<152x8xf32>
    %cst_1 = arith.constant dense<0.000000e+00> : vector<152xf32>
    %8 = vector.multi_reduction <add>, %7, %cst_1 [1] : vector<152x8xf32> to vector<152xf32>
    %9 = vector.shape_cast %8 : vector<152xf32> to vector<152x1xf32>
    %10 = arith.mulf %2, %3 : vector<152x8xf32>
    %cst_2 = arith.constant dense<0.000000e+00> : vector<152xf32>
    %11 = vector.multi_reduction <add>, %10, %cst_2 [1] : vector<152x8xf32> to vector<152xf32>
    %12 = vector.shape_cast %11 : vector<152xf32> to vector<152x1xf32>
    %13 = tpu.concatenate %0, %6, %9, %12 in 1 : vector<152x24xf32>, vector<152x1xf32>, vector<152x1xf32>, vector<152x1xf32> -> vector<152x27xf32>
    %c0_3 = arith.constant 0 : index
    %c0_4 = arith.constant 0 : index
    %14 = vector.load %arg2[%c0_3, %c0_4] : memref<27x128xf32, #tpu.memory_space<vmem>>, vector<27x128xf32>
    %cst_5 = arith.constant dense<0.000000e+00> : vector<152x128xf32>
    %15 = tpu.matmul %13, %14, %cst_5 {dimension_numbers = #tpu.dot_dimension_numbers<[1], [0], [0], [1], [0, 0, 1, 1], [], []>} : vector<152x27xf32>, vector<27x128xf32>, vector<152x128xf32> -> vector<152x128xf32>
    %c0_6 = arith.constant 0 : index
    %c0_7 = arith.constant 0 : index
    %16 = vector.load %arg3[%c0_6, %c0_7] : memref<1x128xf32, #tpu.memory_space<vmem>>, vector<1x128xf32>
    %17 = vector.broadcast %16 : vector<1x128xf32> to vector<152x128xf32>
    %18 = arith.addf %15, %17 : vector<152x128xf32>
    %cst_8 = arith.constant 0.000000e+00 : f32
    %19 = vector.broadcast %cst_8 : f32 to vector<152x128xf32>
    %20 = arith.maximumf %18, %19 : vector<152x128xf32>
    %c0_9 = arith.constant 0 : index
    %c0_10 = arith.constant 0 : index
    %21 = vector.load %arg6[%c0_9, %c0_10] : memref<152x128xf32, #tpu.memory_space<vmem>>, vector<152x128xf32>
    tpu.vector_store %arg6[%c0_9, %c0_10], %20 {strides = array<i32>} : memref<152x128xf32, #tpu.memory_space<vmem>>, vector<152x128xf32>,
    %c0_11 = arith.constant 0 : index
    %c0_12 = arith.constant 0 : index
    %22 = vector.load %arg4[%c0_11, %c0_12] : memref<1x128xf32, #tpu.memory_space<vmem>>, vector<1x128xf32>
    %23 = vector.broadcast %22 : vector<1x128xf32> to vector<152x128xf32>
    %24 = arith.mulf %20, %23 : vector<152x128xf32>
    %cst_13 = arith.constant dense<0.000000e+00> : vector<152xf32>
    %25 = vector.multi_reduction <add>, %24, %cst_13 [1] : vector<152x128xf32> to vector<152xf32>
    %26 = vector.shape_cast %25 : vector<152xf32> to vector<152x1xf32>
    %c0_14 = arith.constant 0 : index
    %27 = memref.load %arg5[%c0_14] : memref<1xf32, #tpu.memory_space<smem>>
    %28 = vector.broadcast %27 : f32 to vector<152x1xf32>
    %29 = arith.addf %26, %28 : vector<152x1xf32>
    %c0_15 = arith.constant 0 : index
    %c0_16 = arith.constant 0 : index
    %30 = vector.load %arg7[%c0_15, %c0_16] : memref<152x1xf32, #tpu.memory_space<vmem>>, vector<152x1xf32>
    tpu.vector_store %arg7[%c0_15, %c0_16], %29 {strides = array<i32>} : memref<152x1xf32, #tpu.memory_space<vmem>>, vector<152x1xf32>,
    return
  }
  func.func @transform_0(%arg0: i32) -> (i32, i32) {
    %c0_i32 = arith.constant 0 : i32
    %c0_i32_0 = arith.constant 0 : i32
    return %arg0, %c0_i32 : i32, i32
  }
  func.func @transform_1(%arg0: i32) -> (i32, i32) {
    %c0_i32 = arith.constant 0 : i32
    %c0_i32_0 = arith.constant 0 : i32
    %c0_i32_1 = arith.constant 0 : i32
    return %c0_i32, %c0_i32_0 : i32, i32
  }
  func.func @transform_2(%arg0: i32) -> (i32, i32) {
    %c0_i32 = arith.constant 0 : i32
    %c0_i32_0 = arith.constant 0 : i32
    %c0_i32_1 = arith.constant 0 : i32
    return %c0_i32, %c0_i32_0 : i32, i32
  }
  func.func @transform_3(%arg0: i32) -> (i32, i32) {
    %c0_i32 = arith.constant 0 : i32
    %c0_i32_0 = arith.constant 0 : i32
    %c0_i32_1 = arith.constant 0 : i32
    return %c0_i32, %c0_i32_0 : i32, i32
  }
  func.func @transform_4(%arg0: i32) -> i32 {
    %c0_i32 = arith.constant 0 : i32
    %c0_i32_0 = arith.constant 0 : i32
    return %c0_i32 : i32
  }
  func.func @transform_5(%arg0: i32) -> (i32, i32) {
    %c0_i32 = arith.constant 0 : i32
    %c0_i32_0 = arith.constant 0 : i32
    return %arg0, %c0_i32 : i32, i32
  }
  func.func @transform_6(%arg0: i32) -> (i32, i32) {
    %c0_i32 = arith.constant 0 : i32
    %c0_i32_0 = arith.constant 0 : i32
    return %arg0, %c0_i32 : i32, i32
  }
}

</mosaic_0001>

<bundles_post_ra>
// kernel: pnn_forward.1
= control target key start
LH: loop header
LB: loop body
LE: loop exit
PB: predicated region body
PF: predicated region fallthrough
CT: control target
= control target key end

     0   :  { %s2281_s0 = inlined_call_operand.vmem [shape: f32[304,24], index: 0, kind: input, shape index: {}]   ;;  %s2282_s1 = inlined_call_operand.vmem [shape: f32[27,128], index: 1, kind: input, shape index: {}]   ;;  %s2283_s2 = inlined_call_operand.vmem [shape: f32[1,128], index: 2, kind: input, shape index: {}]   ;;  %s2284_s3 = inlined_call_operand.vmem [shape: f32[1,128], index: 3, kind: input, shape index: {}]   ;;  %s2285_s4 = inlined_call_operand.<no memory space> [shape: f32[1], index: 4, kind: input, shape index: {}]   ;;  %s2286_s5 = inlined_call_operand.hbm [shape: f32[304,128], index: 5, kind: output, shape index: {0}]   ;;  %s2287_s6 = inlined_call_operand.vmem [shape: f32[304,1], index: 6, kind: output, shape index: {1}]  }
   0x1   :  { %12 = sst [smem:[#allocation2]] %s2285_s4 }
   0x2   :  { %13 = vsyncpa [#allocation4], 0 }
   0x3   :  { %15 = vsyncpa [#allocation4 + $0x1], 0  ;;  %s1542_s23 = smov 0   ;;  %s1544_s24 = smov 0  }
   0x4   :  { %s1546_s25 = smov 0   ;;  %s1548_s26 = smov 0  }
   0x5 LB: > { %s1563_s4 = sadd.s32 4294967295, %s1493_s26   ;;  %s1252_s27 = sadd.s32 4294967294, %s1493_s26   ;;  %s1493_s26 = sphi %s1548_s26, %s2293_s26   ;;  %s1489_s25 = sphi %s1546_s25, %s2292_s25   ;;  %s1485_s24 = sphi %s1544_s24, %s2291_s24   ;;  %s1481_s23 = sphi %s1542_s23, %s2290_s23  }
   0x6   : > { %s1567_s28 = sadd.s32 1, %s1493_s26   ;;  %s138_s29 = sadd.s32 1, %s1489_s25 }
   0x7   : > { %s135_s30 = ssub.s32 %s1493_s26, %s1567_s28  ;;  %p148_p0 = scmp.ne.s32.totalorder %s1489_s25, %s1485_s24 }
   0x8   : > { %p136_p1 = scmp.eq.s32.totalorder %s135_s30, 0  ;;  %p149_p2 = scmp.eq.s32.totalorder %s1563_s4, 1 }
   0x9   : > { %p154_p3 = scmp.ne.s32.totalorder %s1485_s24, %s1481_s23  ;;  %p155_p4 = scmp.eq.s32.totalorder %s1252_s27, 1 }
   0xa   : > { %s1578_s7 = scalar_select %p136_p1, %s1489_s25, %s138_s29  }
   0xb   : > { %p1580_p5 = por %p149_p2, %p148_p0  ;;  %p1584_p6 = por %p155_p4, %p154_p3 }
   0xc   : > { %p1255_p7 = scmp.ge.s32.totalorder %s1493_s26, 1  ;;  %p220_p8 = scmp.lt.s32.totalorder %s1493_s26, 3 }
   0xe   : > { %p221_p9 = pnand %p1255_p7, %p220_p8 }
   0xf   : > { %s255_s10 = smul.u32 (!%p221_p9), 19, %s1563_s4  ;;  %s1495_s15 = smov (!%p221_p9), 120   ;;  %vm382_vm0 = vcmask (!%p221_p9), 64512   ;;  %vm835_vm1 = vcmask (!%p221_p9), 1042432   ;;  %vm1498_vm2 = vmmov (!%p221_p9), 1   ;;  %vm1499_vm4 = vmmov (!%p221_p9), 0  }
  0x10   : > { %224 = sbr.rel (%p221_p9) target bundleno = 834 (0x342), region = 40  ;;  %s1496_s16 = smov (!%p221_p9), 112   ;;  %vm1377_vm3 = vmpackc.low (!%p221_p9), %vm835_vm1, %vm1498_vm2  ;;  %vm706_vm5 = vcmask (!%p221_p9), 195584   ;;  %vm726_vm6 = vcmask (!%p221_p9), 203776   ;;  %vm746_vm7 = vcmask (!%p221_p9), 211968   ;;  %vm777_vm8 = vcmask (!%p221_p9), 220160  }
  0x11   : > { %p256_p10 = scmp.lt.s32.totalorder (!%p221_p9), %s255_s10, 37  ;;  %s245_s30 = sand.u32 (!%p221_p9), 1, %s1485_s24  }
  0x12   : > { %s1383_s12 = smul.u32 (!%p221_p9), 152, %s245_s30  ;;  %s2195_s27 = scalar_lea.sflag (!%p221_p9), [#allocation4], %s245_s30 }
  0x13   : > { %s1283_s18 = smul.u32 (!%p221_p9), 2432, %s1563_s4  ;;  %s1501_s4 = smov (!%p221_p9), [#allocation3]  }
  0x14   : > { %s2126_s17 = scalar_lea.vmem (!%p221_p9), [#allocation3], %s1383_s12  ;;  %s1435_s12 = sshll.u32 (!%p221_p9), %s1501_s4, 4  ;;  %s1436_s12 = int_to_ptr.vmem [resolvable:$false] %s1435_s12 }
  0x15   : > { %s1161_s19 = sshll.u32 (!%p221_p9), %s2126_s17, 4  ;;  %s2189_s22 = scalar_lea.hbm (!%p221_p9), %s2286_s5, %s1283_s18  ;;  %s2191_s19 = int_to_ptr.vmem [resolvable:$true] %s1161_s19 }
  0x16   : > { %s1431_s29 = scalar_lea.vmem (!%p221_p9), %s2191_s19, 2432  ;;  %s1437_s13 = scalar_lea.vmem (!%p221_p9), %s1436_s12, 4864 }
  0x17   : > { %s2295_s10 = smov (!%p256_p10, %s255_s10), 37  ;;  %p1432_p11 = scmp.ne.s32.totalorder %s2191_s19, %s1431_s29 }
  0x18   : > { %s1256_s11 = sshll.u32 %s2295_s10, 3  ;;  %p1438_p0 = scmp.lt.s32.totalorder %s2191_s19, %s1436_s12 }
  0x19   : > { %s1599_s14 = scalar_lea.vmem %s2281_s0, %s1256_s11  ;;  %p1433_p12 = pnand %p1432_p11, %p1580_p5 }
  0x1a   : > { %v1602_v0 = vld [vmem:[%s1599_s14] sm:$0xff]  ;;  %v1605_v1 = vld [vmem:[%s1599_s14 + $0x50] sm:$0xff]  ;;  %v1612_v2 = vld [vmem:[%s1599_s14 + $0x8] sm:$0xff]  ;;  %p1439_p1 = scmp.lt.s32.totalorder %s1437_s13, %s1431_s29 }
  0x1b   : > { %306 = vrot.lane.b32.xlu0 %v1602_v0, %s1495_s15  ;;  %326 = vrot.lane.b32.xlu1 %v1605_v1, %s1495_s15  ;;  %v1615_v3 = vld [vmem:[%s1599_s14 + $0x10] sm:$0xff]  ;;  %v1622_v4 = vld [vmem:[%s1599_s14 + $0x58] sm:$0xff]  ;;  %p1434_p13 = pneg %p1433_p12 }
  0x1c   : > { %v1625_v5 = vld [vmem:[%s1599_s14 + $0x18] sm:$0xff]  ;;  %v1632_v6 = vld [vmem:[%s1599_s14 + $0x60] sm:$0xff]  ;;  %v1642_v8 = vld [vmem:[%s1599_s14 + $0x68] sm:$0xff]  ;;  %p1440_p2 = por %p1439_p1, %p1438_p0 }
  0x1d   : > { %v1635_v7 = vld [vmem:[%s1599_s14 + $0x20] sm:$0xff]  ;;  %v1645_v9 = vld [vmem:[%s1599_s14 + $0x28] sm:$0xff]  ;;  %v1652_v10 = vld [vmem:[%s1599_s14 + $0x70] sm:$0xff] }
  0x1e   : > { %v1655_v11 = vld [vmem:[%s1599_s14 + $0x30] sm:$0xff]  ;;  %v1662_v12 = vld [vmem:[%s1599_s14 + $0x78] sm:$0xff]  ;;  %v1672_v14 = vld [vmem:[%s1599_s14 + $0x80] sm:$0xff]  ;;  %p1441_p3 = pnand %p1440_p2, %p1434_p13 }
  0x1f   : > { %308 = vrot.lane.b32.xlu0 %v1612_v2, %s1495_s15  ;;  %310 = vrot.lane.b32.xlu1 %v1615_v3, %s1495_s15  ;;  %v1665_v13 = vld [vmem:[%s1599_s14 + $0x38] sm:$0xff]  ;;  %v1675_v15 = vld [vmem:[%s1599_s14 + $0x40] sm:$0xff] }
  0x20   : > { %v1682_v16 = vld [vmem:[%s1599_s14 + $0x88] sm:$0xff]  ;;  %v1692_v18 = vld [vmem:[%s1599_s14 + $0x90] sm:$0xff] }
  0x21   : > { %v1685_v17 = vld [vmem:[%s1599_s14 + $0x48] sm:$0xff] }
  0x23   : > { %328 = vrot.lane.b32.xlu0 %v1622_v4, %s1495_s15  ;;  %312 = vrot.lane.b32.xlu1 %v1625_v5, %s1495_s15 }
  0x27   : > { %330 = vrot.lane.b32.xlu0 %v1632_v6, %s1495_s15  ;;  %314 = vrot.lane.b32.xlu1 %v1635_v7, %s1495_s15 }
  0x2b   : > { %332 = vrot.lane.b32.xlu0 %v1642_v8, %s1495_s15  ;;  %316 = vrot.lane.b32.xlu1 %v1645_v9, %s1495_s15 }
  0x2f   : > { %334 = vrot.lane.b32.xlu0 %v1652_v10, %s1495_s15  ;;  %318 = vrot.lane.b32.xlu1 %v1655_v11, %s1495_s15 }
  0x33   : > { %336 = vrot.lane.b32.xlu0 %v1662_v12, %s1495_s15  ;;  %320 = vrot.lane.b32.xlu1 %v1665_v13, %s1495_s15 }
  0x37   : > { %338 = vrot.lane.b32.xlu0 %v1672_v14, %s1495_s15  ;;  %322 = vrot.lane.b32.xlu1 %v1675_v15, %s1495_s15 }
  0x3b   : > { %340 = vrot.lane.b32.xlu0 %v1682_v16, %s1495_s15  ;;  %324 = vrot.lane.b32.xlu1 %v1685_v17, %s1495_s15 }
  0x3f   : > { %342 = vrot.lane.b32.xlu0 %v1692_v18, %s1495_s15  ;;  %440 = vrot.lane.b32.xlu1 %v1602_v0, %s1496_s16 }
  0x43   : > { %460 = vrot.lane.b32.xlu0 %v1605_v1, %s1496_s16  ;;  %442 = vrot.lane.b32.xlu1 %v1612_v2, %s1496_s16 }
  0x47   : > { %462 = vrot.lane.b32.xlu0 %v1622_v4, %s1496_s16  ;;  %444 = vrot.lane.b32.xlu1 %v1615_v3, %s1496_s16 }
  0x4b   : > { %464 = vrot.lane.b32.xlu0 %v1632_v6, %s1496_s16  ;;  %446 = vrot.lane.b32.xlu1 %v1625_v5, %s1496_s16 }
  0x4f   : > { %466 = vrot.lane.b32.xlu0 %v1642_v8, %s1496_s16  ;;  %448 = vrot.lane.b32.xlu1 %v1635_v7, %s1496_s16 }
  0x53   : > { %468 = vrot.lane.b32.xlu0 %v1652_v10, %s1496_s16  ;;  %450 = vrot.lane.b32.xlu1 %v1645_v9, %s1496_s16 }
  0x57   : > { %470 = vrot.lane.b32.xlu0 %v1662_v12, %s1496_s16  ;;  %452 = vrot.lane.b32.xlu1 %v1655_v11, %s1496_s16 }
  0x5b   : > { %472 = vrot.lane.b32.xlu0 %v1672_v14, %s1496_s16  ;;  %454 = vrot.lane.b32.xlu1 %v1665_v13, %s1496_s16 }
  0x5f   : > { %474 = vrot.lane.b32.xlu0 %v1682_v16, %s1496_s16  ;;  %456 = vrot.lane.b32.xlu1 %v1675_v15, %s1496_s16 }
  0x63   : > { %476 = vrot.lane.b32.xlu0 %v1692_v18, %s1496_s16  ;;  %458 = vrot.lane.b32.xlu1 %v1685_v17, %s1496_s16 }
  0x8d   : > { %v307_v19 = vpop.permute.xlu0 %306  ;;  %v327_v20 = vpop.permute.xlu1 %326 }
  0x8e   : > { %v1716_v21 = vmul.f32 %v307_v19, %v1602_v0  ;;  %v373_v22 = vmul.f32 %v327_v20, %v1605_v1 }
  0x90   : > { %592 = vrot.lane.b32.xlu0 %v1716_v21, %s1495_s15  ;;  %v413_v62 = vsel %vm382_vm0, %v373_v22, 0.0  ;;  %v383_v19 = vsel %vm382_vm0, %v1716_v21, 0.0 }
  0x91   : > { %v309_v23 = vpop.permute.xlu0 %308  ;;  %v311_v24 = vpop.permute.xlu1 %310 }
  0x92   : > { %v1722_v25 = vmul.f32 %v309_v23, %v1612_v2  ;;  %v1728_v26 = vmul.f32 %v311_v24, %v1615_v3 }
  0x94   : > { %612 = vrot.lane.b32.xlu0 %v373_v22, %s1495_s15  ;;  %594 = vrot.lane.b32.xlu1 %v1722_v25, %s1495_s15 }
  0x95   : > { %v329_v27 = vpop.permute.xlu0 %328  ;;  %v313_v28 = vpop.permute.xlu1 %312 }
  0x96   : > { %v1731_v29 = vmul.f32 %v329_v27, %v1622_v4  ;;  %v1738_v30 = vmul.f32 %v313_v28, %v1625_v5  ;;  %v386_v27 = vsel %vm382_vm0, %v1722_v25, 0.0  ;;  %v389_v25 = vsel %vm382_vm0, %v1728_v26, 0.0 }
  0x98   : > { %596 = vrot.lane.b32.xlu1 %v1728_v26, %s1495_s15  ;;  %614 = vrot.lane.b32.xlu0 %v1731_v29, %s1495_s15  ;;  %v416_v21 = vsel %vm382_vm0, %v1731_v29, 0.0  ;;  %v392_v26 = vsel %vm382_vm0, %v1738_v30, 0.0 }
  0x99   : > { %v331_v31 = vpop.permute.xlu0 %330  ;;  %v315_v32 = vpop.permute.xlu1 %314 }
  0x9a   : > { %v1741_v33 = vmul.f32 %v331_v31, %v1632_v6  ;;  %v1748_v34 = vmul.f32 %v315_v32, %v1635_v7 }
  0x9c   : > { %598 = vrot.lane.b32.xlu1 %v1738_v30, %s1495_s15  ;;  %616 = vrot.lane.b32.xlu0 %v1741_v33, %s1495_s15  ;;  %v419_v29 = vsel %vm382_vm0, %v1741_v33, 0.0  ;;  %v395_v30 = vsel %vm382_vm0, %v1748_v34, 0.0 }
  0x9d   : > { %v333_v35 = vpop.permute.xlu0 %332  ;;  %v317_v36 = vpop.permute.xlu1 %316 }
  0x9e   : > { %v1751_v37 = vmul.f32 %v333_v35, %v1642_v8  ;;  %v1758_v38 = vmul.f32 %v317_v36, %v1645_v9 }
  0xa0   : > { %600 = vrot.lane.b32.xlu1 %v1748_v34, %s1495_s15  ;;  %618 = vrot.lane.b32.xlu0 %v1751_v37, %s1495_s15  ;;  %v422_v33 = vsel %vm382_vm0, %v1751_v37, 0.0  ;;  %v398_v34 = vsel %vm382_vm0, %v1758_v38, 0.0 }
  0xa1   : > { %v335_v39 = vpop.permute.xlu0 %334  ;;  %v319_v40 = vpop.permute.xlu1 %318 }
  0xa2   : > { %v1761_v41 = vmul.f32 %v335_v39, %v1652_v10  ;;  %v1768_v42 = vmul.f32 %v319_v40, %v1655_v11 }
  0xa4   : > { %602 = vrot.lane.b32.xlu1 %v1758_v38, %s1495_s15  ;;  %620 = vrot.lane.b32.xlu0 %v1761_v41, %s1495_s15  ;;  %v425_v37 = vsel %vm382_vm0, %v1761_v41, 0.0  ;;  %v401_v38 = vsel %vm382_vm0, %v1768_v42, 0.0 }
  0xa5   : > { %v337_v43 = vpop.permute.xlu0 %336  ;;  %v321_v44 = vpop.permute.xlu1 %320 }
  0xa6   : > { %v1771_v45 = vmul.f32 %v337_v43, %v1662_v12  ;;  %v1778_v46 = vmul.f32 %v321_v44, %v1665_v13 }
  0xa8   : > { %604 = vrot.lane.b32.xlu1 %v1768_v42, %s1495_s15  ;;  %622 = vrot.lane.b32.xlu0 %v1771_v45, %s1495_s15  ;;  %v428_v41 = vsel %vm382_vm0, %v1771_v45, 0.0  ;;  %v404_v42 = vsel %vm382_vm0, %v1778_v46, 0.0 }
  0xa9   : > { %v339_v47 = vpop.permute.xlu0 %338  ;;  %v323_v48 = vpop.permute.xlu1 %322 }
  0xaa   : > { %v1781_v49 = vmul.f32 %v339_v47, %v1672_v14  ;;  %v1788_v50 = vmul.f32 %v323_v48, %v1675_v15 }
  0xac   : > { %606 = vrot.lane.b32.xlu1 %v1778_v46, %s1495_s15  ;;  %624 = vrot.lane.b32.xlu0 %v1781_v49, %s1495_s15  ;;  %v407_v46 = vsel %vm382_vm0, %v1788_v50, 0.0 }
  0xad   : > { %v341_v51 = vpop.permute.xlu0 %340  ;;  %v325_v52 = vpop.permute.xlu1 %324 }
  0xae   : > { %v1791_v53 = vmul.f32 %v341_v51, %v1682_v16  ;;  %v1798_v54 = vmul.f32 %v325_v52, %v1685_v17 }
  0xb0   : > { %608 = vrot.lane.b32.xlu1 %v1788_v50, %s1495_s15  ;;  %626 = vrot.lane.b32.xlu0 %v1791_v53, %s1495_s15  ;;  %v766_v50 = vld [vmem:[%s2282_s1] sm:$0xff] }
  0xb1   : > { %v343_v55 = vpop.permute.xlu0 %342  ;;  %v441_v57 = vpop.permute.xlu1 %440 }
  0xb2   : > { %v1801_v56 = vmul.f32 %v343_v55, %v1692_v18  ;;  %v497_v58 = vmul.f32 %v441_v57, %v1602_v0 }
  0xb4   : > { %610 = vrot.lane.b32.xlu1 %v1798_v54, %s1495_s15  ;;  %628 = vrot.lane.b32.xlu0 %v1801_v56, %s1495_s15  ;;  %v516_v59 = vsel %vm382_vm0, %v497_v58, 0.0 }
  0xb5   : > { %v461_v60 = vpop.permute.xlu0 %460  ;;  %v443_v63 = vpop.permute.xlu1 %442 }
  0xb6   : > { %v507_v61 = vmul.f32 %v461_v60, %v1605_v1  ;;  %v498_v24 = vmul.f32 %v443_v63, %v1612_v2 }
  0xb8   : > { %v546_v23 = vsel %vm382_vm0, %v507_v61, 0.0  ;;  %v519_v32 = vsel %vm382_vm0, %v498_v24, 0.0 }
  0xb9   : > { %v463_v20 = vpop.permute.xlu0 %462  ;;  %v445_v22 = vpop.permute.xlu1 %444 }
  0xba   : > { %v508_v31 = vmul.f32 %v463_v20, %v1622_v4  ;;  %v499_v39 = vmul.f32 %v445_v22, %v1615_v3 }
  0xbc   : > { %v549_v35 = vsel %vm382_vm0, %v508_v31, 0.0  ;;  %v522_v44 = vsel %vm382_vm0, %v499_v39, 0.0 }
  0xbd   : > { %v465_v28 = vpop.permute.xlu0 %464  ;;  %v447_v36 = vpop.permute.xlu1 %446 }
  0xbe   : > { %v509_v43 = vmul.f32 %v465_v28, %v1632_v6  ;;  %v500_v52 = vmul.f32 %v447_v36, %v1625_v5 }
  0xc0   : > { %v552_v51 = vsel %vm382_vm0, %v509_v43, 0.0 }
  0xc1   : > { %v467_v40 = vpop.permute.xlu0 %466  ;;  %v449_v47 = vpop.permute.xlu1 %448 }
  0xc2   : > { %v510_v55 = vmul.f32 %v467_v40, %v1642_v8 }
  0xc4   : > { %v555_v60 = vsel %vm382_vm0, %v510_v55, 0.0 }
  0xc5   : > { %v469_v48 = vpop.permute.xlu0 %468  ;;  %v451_v57 = vpop.permute.xlu1 %450 }
  0xc6   : > { %v502_v28 = vmul.f32 %v451_v57, %v1645_v9 }
  0xc9   : > { %v471_v58 = vpop.permute.xlu0 %470  ;;  %v453_v61 = vpop.permute.xlu1 %452 }
  0xca   : > { %v512_v31 = vmul.f32 %v471_v58, %v1662_v12  ;;  %v503_v36 = vmul.f32 %v453_v61, %v1655_v11 }
  0xcc   : > { %v534_v43 = vsel %vm382_vm0, %v503_v36, 0.0 }
  0xcd   : > { %v473_v63 = vpop.permute.xlu0 %472 }
  0xce   : > { %v513_v45 = vmul.f32 %v473_v63, %v1672_v14 }
  0xd1   : > { %v475_v24 = vpop.permute.xlu0 %474 }
  0xd3   : > { %517 = vadd.xlane.f32.xlu0 %v516_v59  ;;  %v525_v59 = vsel %vm382_vm0, %v500_v52, 0.0 }
  0xd7   : > { %414 = vadd.xlane.f32.xlu0 %v413_v62  ;;  %v501_v62 = vmul.f32 %v449_v47, %v1635_v7 }
  0xd8   : > { %384 = vadd.xlane.f32.xlu1 %v383_v19  ;;  %v511_v19 = vmul.f32 %v469_v48, %v1652_v10 }
  0xd9   : > { %v528_v20 = vsel %vm382_vm0, %v501_v62, 0.0 }
  0xdb   : > { %547 = vadd.xlane.f32.xlu0 %v546_v23  ;;  %v455_v23 = vpop.permute.xlu1 %454 }
  0xdc   : > { %387 = vadd.xlane.f32.xlu1 %v386_v27  ;;  %v558_v27 = vsel %vm382_vm0, %v511_v19, 0.0  ;;  %v504_v47 = vmul.f32 %v455_v23, %v1665_v13  ;;  %v767_v19 = vld [vmem:[%s2282_s1 + $0x8] sm:$0xff]  ;;  %v1497_v23 = vmov 0.0|0.0  }
  0xdd   : > { %1372 = vmatprep.subr.bf16.mxu0 %v1497_v23  ;;  %1379 = vmatprep.subr.bf16.mxu1 %v1497_v23 }
  0xdf   : > { %417 = vadd.xlane.f32.xlu0 %v416_v21  ;;  %v457_v22 = vpop.permute.xlu1 %456  ;;  %v531_v21 = vsel %vm382_vm0, %v502_v28, 0.0  ;;  %v769_v28 = vld [vmem:[%s2282_s1 + $0x18] sm:$0x7] }
  0xe0   : > { %520 = vadd.xlane.f32.xlu1 %v519_v32  ;;  %v1852_v32 = vpop.permute.xlu0 %476  ;;  %v505_v58 = vmul.f32 %v457_v22, %v1675_v15 }
  0xe3   : > { %550 = vadd.xlane.f32.xlu0 %v549_v35  ;;  %v561_v35 = vsel %vm382_vm0, %v512_v31, 0.0  ;;  %v1859_v39 = vpop.permute.xlu1 %458 }
  0xe4   : > { %390 = vadd.xlane.f32.xlu1 %v389_v25  ;;  %v431_v25 = vsel %vm382_vm0, %v1781_v49, 0.0  ;;  %v434_v49 = vsel %vm382_vm0, %v1791_v53, 0.0  ;;  %v540_v53 = vsel %vm382_vm0, %v505_v58, 0.0  ;;  %v437_v58 = vsel %vm382_vm0, %v1801_v56, 0.0 }
  0xe7   : > { %420 = vadd.xlane.f32.xlu0 %v419_v29  ;;  %v564_v29 = vsel %vm382_vm0, %v513_v45, 0.0 }
  0xe8   : > { %523 = vadd.xlane.f32.xlu1 %v522_v44 }
  0xeb   : > { %553 = vadd.xlane.f32.xlu0 %v552_v51  ;;  %v514_v51 = vmul.f32 %v475_v24, %v1682_v16 }
  0xec   : > { %393 = vadd.xlane.f32.xlu1 %v392_v26  ;;  %v537_v26 = vsel %vm382_vm0, %v504_v47, 0.0 }
  0xed   : > { %v567_v57 = vsel %vm382_vm0, %v514_v51, 0.0 }
  0xef   : > { %423 = vadd.xlane.f32.xlu0 %v422_v33 }
  0xf0   : > { %526 = vadd.xlane.f32.xlu1 %v525_v59 }
  0xf3   : > { %556 = vadd.xlane.f32.xlu0 %v555_v60 }
  0xf4   : > { %396 = vadd.xlane.f32.xlu1 %v395_v30 }
  0xf7   : > { %426 = vadd.xlane.f32.xlu0 %v425_v37  ;;  %v1373_v37 = vpack.c.bf16 %v767_v19, %v766_v50 }
  0xf8   : > { %529 = vadd.xlane.f32.xlu1 %v528_v20 }
  0xf9   : > { %1374 = vmatpush3.bf16.msra.mxu0 %v1373_v37  ;;  %1381 = vmatpush3.bf16.msra.mxu1 %v1373_v37 }
  0xfa   : > { %1375 = vmatprep.subr.bf16.mxu0 %v1497_v23  ;;  %1380 = vmatprep.subr.bf16.mxu1 %v1497_v23 }
  0xfb   : > { %559 = vadd.xlane.f32.xlu0 %v558_v27  ;;  %v768_v27 = vld [vmem:[%s2282_s1 + $0x10] sm:$0xff] }
  0xfc   : > { %399 = vadd.xlane.f32.xlu1 %v398_v34  ;;  %v1376_v31 = vpack.c.bf16 %v769_v28, %v768_v27 }
  0xfe   : > { %1378 = vmatpush3.bf16.msk.msra.mxu0 %vm1377_vm3, %v1376_v31  ;;  %1382 = vmatpush3.bf16.msk.msra.mxu1 %vm1377_vm3, %v1376_v31 }
  0xff   : > { %429 = vadd.xlane.f32.xlu0 %v428_v41 }
 0x100   : > { %532 = vadd.xlane.f32.xlu1 %v531_v21 }
 0x102   : > { %v593_v40 = vpop.permute.xlu0 %592 }
 0x103   : > { %562 = vadd.xlane.f32.xlu0 %v561_v35  ;;  %v649_v60 = vsel %vm382_vm0, %v593_v40, 0.0  ;;  %v1500_v35 = vmov 0.0  }
 0x104   : > { %402 = vadd.xlane.f32.xlu1 %v401_v38  ;;  %1315 = vmatprep.mubr.msk.f32.mxu0 %vm1499_vm4, %v1500_v35 }
 0x105   : > { %1345 = vmatprep.mubr.msk.f32.mxu1 %vm1499_vm4, %v1500_v35 }
 0x106   : > { %v595_v44 = vpop.permute.xlu1 %594  ;;  %v613_v48 = vpop.permute.xlu0 %612 }
 0x107   : > { %432 = vadd.xlane.f32.xlu0 %v431_v25  ;;  %v679_v61 = vsel %vm382_vm0, %v613_v48, 0.0  ;;  %v652_v30 = vsel %vm382_vm0, %v595_v44, 0.0 }
 0x108   : > { %535 = vadd.xlane.f32.xlu1 %v534_v43 }
 0x10a   : > { %v615_v52 = vpop.permute.xlu0 %614  ;;  %v597_v55 = vpop.permute.xlu1 %596 }
 0x10b   : > { %565 = vadd.xlane.f32.xlu0 %v564_v29  ;;  %v682_v20 = vsel %vm382_vm0, %v615_v52, 0.0  ;;  %v655_v24 = vsel %vm382_vm0, %v597_v55, 0.0 }
 0x10c   : > { %405 = vadd.xlane.f32.xlu1 %v404_v42 }
 0x10e   : > { %v617_v33 = vpop.permute.xlu0 %616  ;;  %v599_v59 = vpop.permute.xlu1 %598 }
 0x10f   : > { %435 = vadd.xlane.f32.xlu0 %v434_v49  ;;  %v685_v22 = vsel %vm382_vm0, %v617_v33, 0.0  ;;  %v658_v21 = vsel %vm382_vm0, %v599_v59, 0.0  ;;  %v410_v33 = vsel %vm382_vm0, %v1798_v54, 0.0 }
 0x110   : > { %538 = vadd.xlane.f32.xlu1 %v537_v26 }
 0x112   : > { %v619_v62 = vpop.permute.xlu0 %618  ;;  %v601_v63 = vpop.permute.xlu1 %600 }
 0x113   : > { %568 = vadd.xlane.f32.xlu0 %v567_v57  ;;  %v688_v36 = vsel %vm382_vm0, %v619_v62, 0.0  ;;  %v661_v40 = vsel %vm382_vm0, %v601_v63, 0.0  ;;  %v515_v57 = vmul.f32 %v1852_v32, %v1692_v18 }
 0x114   : > { %408 = vadd.xlane.f32.xlu1 %v407_v46  ;;  %v506_v46 = vmul.f32 %v1859_v39, %v1685_v17 }
 0x115   : > { %v570_v59 = vsel %vm382_vm0, %v515_v57, 0.0 }
 0x116   : > { %v621_v34 = vpop.permute.xlu0 %620  ;;  %v603_v41 = vpop.permute.xlu1 %602 }
 0x117   : > { %650 = vadd.xlane.f32.xlu0 %v649_v60  ;;  %v691_v25 = vsel %vm382_vm0, %v621_v34, 0.0  ;;  %v664_v43 = vsel %vm382_vm0, %v603_v41, 0.0 }
 0x118   : > { %541 = vadd.xlane.f32.xlu1 %v540_v53  ;;  %v543_v53 = vsel %vm382_vm0, %v506_v46, 0.0 }
 0x11a   : > { %v623_v38 = vpop.permute.xlu0 %622  ;;  %v605_v45 = vpop.permute.xlu1 %604 }
 0x11b   : > { %680 = vadd.xlane.f32.xlu0 %v679_v61  ;;  %v694_v47 = vsel %vm382_vm0, %v623_v38, 0.0  ;;  %v667_v48 = vsel %vm382_vm0, %v605_v45, 0.0 }
 0x11c   : > { %653 = vadd.xlane.f32.xlu1 %v652_v30 }
 0x11e   : > { %v625_v44 = vpop.permute.xlu0 %624  ;;  %v607_v29 = vpop.permute.xlu1 %606 }
 0x11f   : > { %683 = vadd.xlane.f32.xlu0 %v682_v20  ;;  %v697_v42 = vsel %vm382_vm0, %v625_v44, 0.0  ;;  %v670_v51 = vsel %vm382_vm0, %v607_v29, 0.0 }
 0x120   : > { %656 = vadd.xlane.f32.xlu1 %v655_v24 }
 0x122   : > { %v627_v49 = vpop.permute.xlu0 %626  ;;  %v609_v52 = vpop.permute.xlu1 %608 }
 0x123   : > { %686 = vadd.xlane.f32.xlu0 %v685_v22  ;;  %v700_v26 = vsel %vm382_vm0, %v627_v49, 0.0  ;;  %v673_v55 = vsel %vm382_vm0, %v609_v52, 0.0 }
 0x124   : > { %659 = vadd.xlane.f32.xlu1 %v658_v21 }
 0x126   : > { %v629_v60 = vpop.permute.xlu0 %628  ;;  %v611_v61 = vpop.permute.xlu1 %610 }
 0x127   : > { %689 = vadd.xlane.f32.xlu0 %v688_v36  ;;  %v703_v32 = vsel %vm382_vm0, %v629_v60, 0.0  ;;  %v676_v56 = vsel %vm382_vm0, %v611_v61, 0.0 }
 0x128   : > { %662 = vadd.xlane.f32.xlu1 %v661_v40 }
 0x12b   : > { %692 = vadd.xlane.f32.xlu0 %v691_v25 }
 0x12c   : > { %665 = vadd.xlane.f32.xlu1 %v664_v43 }
 0x12f   : > { %695 = vadd.xlane.f32.xlu0 %v694_v47 }
 0x130   : > { %668 = vadd.xlane.f32.xlu1 %v667_v48 }
 0x133   : > { %698 = vadd.xlane.f32.xlu0 %v697_v42 }
 0x134   : > { %671 = vadd.xlane.f32.xlu1 %v670_v51 }
 0x137   : > { %701 = vadd.xlane.f32.xlu0 %v700_v26 }
 0x138   : > { %674 = vadd.xlane.f32.xlu1 %v673_v55 }
 0x13b   : > { %438 = vadd.xlane.f32.xlu0 %v437_v58 }
 0x13c   : > { %411 = vadd.xlane.f32.xlu1 %v410_v33 }
 0x13f   : > { %571 = vadd.xlane.f32.xlu0 %v570_v59 }
 0x140   : > { %544 = vadd.xlane.f32.xlu1 %v543_v53 }
 0x143   : > { %704 = vadd.xlane.f32.xlu0 %v703_v32 }
 0x144   : > { %677 = vadd.xlane.f32.xlu1 %v676_v56 }
 0x160   : > { %v518_v39 = vpop.xlane.xlu0 %517 }
 0x164   : > { %v415_v62 = vpop.xlane.xlu0 %414 }
 0x165   : > { %v385_v30 = vpop.xlane.xlu1 %384  ;;  %v717_v59 = vsel %vm706_vm5, %v1605_v1, %v415_v62 }
 0x166   : > { %v707_v26 = vsel %vm706_vm5, %v1602_v0, %v385_v30 }
 0x167   : > { %v727_v57 = vsel %vm726_vm6, %v707_v26, %v518_v39 }
 0x168   : > { %v548_v63 = vpop.xlane.xlu0 %547 }
 0x169   : > { %v388_v54 = vpop.xlane.xlu1 %387  ;;  %v737_v0 = vsel %vm726_vm6, %v717_v59, %v548_v63 }
 0x16a   : > { %v708_v60 = vsel %vm706_vm5, %v1612_v2, %v388_v54 }
 0x16c   : > { %v418_v50 = vpop.xlane.xlu0 %417 }
 0x16d   : > { %v521_v19 = vpop.xlane.xlu1 %520  ;;  %v718_v1 = vsel %vm706_vm5, %v1622_v4, %v418_v50 }
 0x16e   : > { %v728_v61 = vsel %vm726_vm6, %v708_v60, %v521_v19 }
 0x170   : > { %v551_v37 = vpop.xlane.xlu0 %550 }
 0x171   : > { %v391_v20 = vpop.xlane.xlu1 %390  ;;  %v738_v2 = vsel %vm726_vm6, %v718_v1, %v551_v37 }
 0x172   : > { %v709_v62 = vsel %vm706_vm5, %v1615_v3, %v391_v20 }
 0x174   : > { %v421_v23 = vpop.xlane.xlu0 %420 }
 0x175   : > { %v524_v24 = vpop.xlane.xlu1 %523  ;;  %v719_v50 = vsel %vm706_vm5, %v1632_v6, %v421_v23 }
 0x176   : > { %v729_v63 = vsel %vm726_vm6, %v709_v62, %v524_v24 }
 0x178   : > { %v554_v27 = vpop.xlane.xlu0 %553 }
 0x179   : > { %v394_v28 = vpop.xlane.xlu1 %393  ;;  %v739_v3 = vsel %vm726_vm6, %v719_v50, %v554_v27  ;;  %v2124_v50 = vld [vmem:[%s2284_s3] ss:$0 sm:$0xff] }
 0x17a   : > { %v710_v37 = vsel %vm706_vm5, %v1625_v5, %v394_v28 }
 0x17c   : > { %v1923_v34 = vpop.xlane.xlu0 %423 }
 0x17d   : > { %v527_v31 = vpop.xlane.xlu1 %526  ;;  %v720_v23 = vsel %vm706_vm5, %v1642_v8, %v1923_v34 }
 0x17e   : > { %v730_v24 = vsel %vm726_vm6, %v710_v37, %v527_v31 }
 0x180   : > { %v1925_v22 = vpop.xlane.xlu0 %556 }
 0x181   : > { %v1927_v41 = vpop.xlane.xlu1 %396  ;;  %v740_v5 = vsel %vm726_vm6, %v720_v23, %v1925_v22 }
 0x182   : > { %v711_v27 = vsel %vm706_vm5, %v1635_v7, %v1927_v41 }
 0x184   : > { %v1929_v21 = vpop.xlane.xlu0 %426 }
 0x185   : > { %v1931_v36 = vpop.xlane.xlu1 %529  ;;  %v721_v22 = vsel %vm706_vm5, %v1652_v10, %v1929_v21 }
 0x186   : > { %v731_v31 = vsel %vm726_vm6, %v711_v27, %v1931_v36 }
 0x188   : > { %v1933_v38 = vpop.xlane.xlu0 %559 }
 0x189   : > { %v1935_v40 = vpop.xlane.xlu1 %399  ;;  %v741_v7 = vsel %vm726_vm6, %v721_v22, %v1933_v38 }
 0x18a   : > { %v712_v41 = vsel %vm706_vm5, %v1645_v9, %v1935_v40 }
 0x18c   : > { %v1937_v45 = vpop.xlane.xlu0 %429 }
 0x18d   : > { %v1939_v25 = vpop.xlane.xlu1 %532  ;;  %v722_v38 = vsel %vm706_vm5, %v1662_v12, %v1937_v45 }
 0x190   : > { %v1941_v43 = vpop.xlane.xlu0 %562 }
 0x191   : > { %v1943_v44 = vpop.xlane.xlu1 %402  ;;  %v742_v9 = vsel %vm726_vm6, %v722_v38, %v1941_v43 }
 0x192   : > { %v713_v40 = vsel %vm706_vm5, %v1655_v11, %v1943_v44 }
 0x194   : > { %v1945_v29 = vpop.xlane.xlu0 %432 }
 0x195   : > { %v1947_v47 = vpop.xlane.xlu1 %535  ;;  %v723_v43 = vsel %vm706_vm5, %v1672_v14, %v1945_v29 }
 0x198   : > { %v1949_v48 = vpop.xlane.xlu0 %565 }
 0x199   : > { %v1951_v42 = vpop.xlane.xlu1 %405  ;;  %v743_v11 = vsel %vm726_vm6, %v723_v43, %v1949_v48 }
 0x19a   : > { %v714_v44 = vsel %vm706_vm5, %v1665_v13, %v1951_v42 }
 0x19c   : > { %v1953_v51 = vpop.xlane.xlu0 %435 }
 0x19d   : > { %v1955_v49 = vpop.xlane.xlu1 %538  ;;  %v724_v48 = vsel %vm706_vm5, %v1682_v16, %v1953_v51 }
 0x1a0   : > { %v1957_v52 = vpop.xlane.xlu0 %568 }
 0x1a1   : > { %v1961_v55 = vpop.xlane.xlu1 %408  ;;  %v744_v13 = vsel %vm726_vm6, %v724_v48, %v1957_v52 }
 0x1a2   : > { %v715_v42 = vsel %vm706_vm5, %v1675_v15, %v1961_v55 }
 0x1a4   : > { %v651_v58 = vpop.xlane.xlu0 %650 }
 0x1a5   : > { %v747_v46 = vsel %vm746_vm7, %v727_v57, %v651_v58  ;;  %v1965_v33 = vpop.xlane.xlu1 %541 }
 0x1a6   : > { %1316 = vmatmul.mubr.msk.f32.vlgmr.msra.gmra.mrb[0].mxu0 %vm777_vm8, %v747_v46  ;;  %v732_v46 = vsel %vm726_vm6, %v712_v41, %v1939_v25 }
 0x1a7   : > { %1318 = vmatprep.mubr.msk.f32.mxu0 %vm1499_vm4, %v1500_v35 }
 0x1a8   : > { %v681_v53 = vpop.xlane.xlu0 %680 }
 0x1a9   : > { %v757_v32 = vsel %vm746_vm7, %v737_v0, %v681_v53  ;;  %v654_v56 = vpop.xlane.xlu1 %653  ;;  %v733_v0 = vsel %vm726_vm6, %v713_v40, %v1947_v47  ;;  %v734_v53 = vsel %vm726_vm6, %v714_v44, %v1955_v49 }
 0x1aa   : > { %v748_v39 = vsel %vm746_vm7, %v728_v61, %v654_v56  ;;  %1346 = vmatmul.mubr.msk.f32.vlgmr.msra.gmra.mrb[0].mxu1 %vm777_vm8, %v757_v32  ;;  %v735_v32 = vsel %vm726_vm6, %v715_v42, %v1965_v33 }
 0x1ab   : > { %1319 = vmatmul.mubr.msk.f32.gmra.mrb[2].mxu0 %vm777_vm8, %v748_v39  ;;  %1348 = vmatprep.mubr.msk.f32.mxu1 %vm1499_vm4, %v1500_v35 }
 0x1ac   : > { %v684_v30 = vpop.xlane.xlu0 %683  ;;  %1321 = vmatprep.mubr.msk.f32.mxu0 %vm1499_vm4, %v1500_v35 }
 0x1ad   : > { %v758_v54 = vsel %vm746_vm7, %v738_v2, %v684_v30  ;;  %v657_v19 = vpop.xlane.xlu1 %656 }
 0x1ae   : > { %v749_v4 = vsel %vm746_vm7, %v729_v63, %v657_v19  ;;  %1349 = vmatmul.mubr.msk.f32.gmra.mrb[2].mxu1 %vm777_vm8, %v758_v54 }
 0x1af   : > { %1322 = vmatmul.mubr.msk.f32.gmra.mrb[4].mxu0 %vm777_vm8, %v749_v4  ;;  %1351 = vmatprep.mubr.msk.f32.mxu1 %vm1499_vm4, %v1500_v35 }
 0x1b0   : > { %v687_v20 = vpop.xlane.xlu0 %686  ;;  %1324 = vmatprep.mubr.msk.f32.mxu0 %vm1499_vm4, %v1500_v35 }
 0x1b1   : > { %v759_v26 = vsel %vm746_vm7, %v739_v3, %v687_v20  ;;  %v660_v57 = vpop.xlane.xlu1 %659 }
 0x1b2   : > { %v750_v6 = vsel %vm746_vm7, %v730_v24, %v660_v57  ;;  %1352 = vmatmul.mubr.msk.f32.gmra.mrb[4].mxu1 %vm777_vm8, %v759_v26 }
 0x1b3   : > { %1325 = vmatmul.mubr.msk.f32.gmra.mrb[6].mxu0 %vm777_vm8, %v750_v6  ;;  %1354 = vmatprep.mubr.msk.f32.mxu1 %vm1499_vm4, %v1500_v35 }
 0x1b4   : > { %v690_v28 = vpop.xlane.xlu0 %689  ;;  %1327 = vmatprep.mubr.msk.f32.mxu0 %vm1499_vm4, %v1500_v35 }
 0x1b5   : > { %v760_v8 = vsel %vm746_vm7, %v740_v5, %v690_v28  ;;  %v663_v34 = vpop.xlane.xlu1 %662 }
 0x1b6   : > { %v751_v58 = vsel %vm746_vm7, %v731_v31, %v663_v34  ;;  %1355 = vmatmul.mubr.msk.f32.gmra.mrb[6].mxu1 %vm777_vm8, %v760_v8 }
 0x1b7   : > { %1328 = vmatmul.mubr.msk.f32.gmra.mrb[8].mxu0 %vm777_vm8, %v751_v58  ;;  %1357 = vmatprep.mubr.msk.f32.mxu1 %vm1499_vm4, %v1500_v35 }
 0x1b8   : > { %v693_v36 = vpop.xlane.xlu0 %692  ;;  %1330 = vmatprep.mubr.msk.f32.mxu0 %vm1499_vm4, %v1500_v35 }
 0x1b9   : > { %v761_v10 = vsel %vm746_vm7, %v741_v7, %v693_v36  ;;  %v666_v21 = vpop.xlane.xlu1 %665 }
 0x1ba   : > { %v752_v59 = vsel %vm746_vm7, %v732_v46, %v666_v21  ;;  %1358 = vmatmul.mubr.msk.f32.gmra.mrb[8].mxu1 %vm777_vm8, %v761_v10 }
 0x1bb   : > { %1331 = vmatmul.mubr.msk.f32.gmra.mrb[10].mxu0 %vm777_vm8, %v752_v59  ;;  %1360 = vmatprep.mubr.msk.f32.mxu1 %vm1499_vm4, %v1500_v35 }
 0x1bc   : > { %v696_v25 = vpop.xlane.xlu0 %695  ;;  %1333 = vmatprep.mubr.msk.f32.mxu0 %vm1499_vm4, %v1500_v35 }
 0x1bd   : > { %v762_v12 = vsel %vm746_vm7, %v742_v9, %v696_v25  ;;  %v669_v45 = vpop.xlane.xlu1 %668 }
 0x1be   : > { %v753_v60 = vsel %vm746_vm7, %v733_v0, %v669_v45  ;;  %1361 = vmatmul.mubr.msk.f32.gmra.mrb[10].mxu1 %vm777_vm8, %v762_v12 }
 0x1bf   : > { %1334 = vmatmul.mubr.msk.f32.gmra.mrb[12].mxu0 %vm777_vm8, %v753_v60  ;;  %1363 = vmatprep.mubr.msk.f32.mxu1 %vm1499_vm4, %v1500_v35 }
 0x1c0   : > { %v699_v47 = vpop.xlane.xlu0 %698  ;;  %1336 = vmatprep.mubr.msk.f32.mxu0 %vm1499_vm4, %v1500_v35 }
 0x1c1   : > { %v763_v14 = vsel %vm746_vm7, %v743_v11, %v699_v47  ;;  %v672_v29 = vpop.xlane.xlu1 %671 }
 0x1c2   : > { %v754_v61 = vsel %vm746_vm7, %v734_v53, %v672_v29  ;;  %1364 = vmatmul.mubr.msk.f32.gmra.mrb[12].mxu1 %vm777_vm8, %v763_v14 }
 0x1c3   : > { %1337 = vmatmul.mubr.msk.f32.gmra.mrb[14].mxu0 %vm777_vm8, %v754_v61  ;;  %1366 = vmatprep.mubr.msk.f32.mxu1 %vm1499_vm4, %v1500_v35 }
 0x1c4   : > { %v702_v49 = vpop.xlane.xlu0 %701  ;;  %1339 = vmatprep.mubr.msk.f32.mxu0 %vm1499_vm4, %v1500_v35 }
 0x1c5   : > { %v764_v16 = vsel %vm746_vm7, %v744_v13, %v702_v49  ;;  %v675_v51 = vpop.xlane.xlu1 %674 }
 0x1c6   : > { %v755_v56 = vsel %vm746_vm7, %v735_v32, %v675_v51  ;;  %1367 = vmatmul.mubr.msk.f32.gmra.mrb[14].mxu1 %vm777_vm8, %v764_v16 }
 0x1c7   : > { %1340 = vmatmul.mubr.msk.f32.gmra.mrb[16].mxu0 %vm777_vm8, %v755_v56  ;;  %1369 = vmatprep.mubr.msk.f32.mxu1 %vm1499_vm4, %v1500_v35 }
 0x1c8   : > { %v439_v15 = vpop.xlane.xlu0 %438  ;;  %1342 = vmatprep.mubr.msk.f32.mxu0 %vm1499_vm4, %v1500_v35 }
 0x1c9   : > { %v412_v52 = vpop.xlane.xlu1 %411  ;;  %v725_v39 = vsel %vm706_vm5, %v1692_v18, %v439_v15 }
 0x1ca   : > { %v716_v1 = vsel %vm706_vm5, %v1685_v17, %v412_v52  ;;  %v2118_v17 = vld [vmem:[%s2283_s2] ss:$0 sm:$0xff] }
 0x1cc   : > { %v572_v55 = vpop.xlane.xlu0 %571 }
 0x1cd   : > { %v545_v33 = vpop.xlane.xlu1 %544  ;;  %v745_v2 = vsel %vm726_vm6, %v725_v39, %v572_v55 }
 0x1ce   : > { %v736_v30 = vsel %vm726_vm6, %v716_v1, %v545_v33 }
 0x1d0   : > { %v705_v62 = vpop.xlane.xlu0 %704 }
 0x1d1   : > { %v765_v63 = vsel %vm746_vm7, %v745_v2, %v705_v62  ;;  %v678_v54 = vpop.xlane.xlu1 %677 }
 0x1d2   : > { %v756_v19 = vsel %vm746_vm7, %v736_v30, %v678_v54  ;;  %1370 = vmatmul.mubr.msk.f32.gmra.mrb[16].mxu1 %vm777_vm8, %v765_v63 }
 0x1d3   : > { %1343 = vmatmul.mubr.msk.f32.gmra.mrb[18].mxu0 %vm777_vm8, %v756_v19 }
 0x279   : > { %v905_v18 = vpop.f32.mrb[0].mxu0 }
 0x27a   : > { %v906_v35 = vadd.f32 %v2118_v17, %v905_v18  ;;  %v1317_v4 = vpop.f32.mrb[1].mxu0 }
 0x27c   : > { %v999_v3 = vmax.f32 %v906_v35, 0.0 }
 0x27d   : > { %v955_v37 = vpop.f32.mrb[0].mxu1 }
 0x27e   : > { %1018 = vst [vmem:[%s2126_s17] sm:$0xff] %v999_v3  ;;  %v1044_v20 = vmul.f32 %v2124_v50, %v999_v3  ;;  %v956_v24 = vadd.f32 %v2118_v17, %v955_v37  ;;  %v910_v26 = vpop.f32.mrb[2].mxu0  ;;  %v1347_v57 = vpop.f32.mrb[1].mxu1 }
 0x27f   : > { %v911_v6 = vadd.f32 %v2118_v17, %v910_v26  ;;  %v1320_v23 = vpop.f32.mrb[3].mxu0 }
 0x280   : > { %v1009_v5 = vmax.f32 %v956_v24, 0.0  ;;  %1063 = vadd.xlane.f32.xlu1 %v1044_v20 }
 0x281   : > { %v1000_v27 = vmax.f32 %v911_v6, 0.0  ;;  %v960_v28 = vpop.f32.mrb[2].mxu1 }
 0x282   : > { %1028 = vst [vmem:[%s2126_s17 + $0x50] sm:$0xff] %v1009_v5  ;;  %v1054_v31 = vmul.f32 %v2124_v50, %v1009_v5  ;;  %v961_v8 = vadd.f32 %v2118_v17, %v960_v28  ;;  %v915_v34 = vpop.f32.mrb[4].mxu0  ;;  %v1350_v58 = vpop.f32.mrb[3].mxu1 }
 0x283   : > { %1019 = vst [vmem:[%s2126_s17 + $0x8] sm:$0xff] %v1000_v27  ;;  %v1045_v22 = vmul.f32 %v2124_v50, %v1000_v27  ;;  %v916_v7 = vadd.f32 %v2118_v17, %v915_v34  ;;  %v1323_v41 = vpop.f32.mrb[5].mxu0 }
 0x284   : > { %v1010_v36 = vmax.f32 %v961_v8, 0.0  ;;  %1083 = vadd.xlane.f32.xlu1 %v1054_v31 }
 0x285   : > { %v1001_v46 = vmax.f32 %v916_v7, 0.0  ;;  %1065 = vadd.xlane.f32.xlu0 %v1045_v22  ;;  %v965_v10 = vpop.f32.mrb[4].mxu1 }
 0x286   : > { %1029 = vst [vmem:[%s2126_s17 + $0x58] sm:$0xff] %v1010_v36  ;;  %v1055_v21 = vmul.f32 %v2124_v50, %v1010_v36  ;;  %v966_v59 = vadd.f32 %v2118_v17, %v965_v10  ;;  %v920_v38 = vpop.f32.mrb[6].mxu0  ;;  %v1353_v9 = vpop.f32.mrb[5].mxu1 }
 0x287   : > { %1020 = vst [vmem:[%s2126_s17 + $0x10] sm:$0xff] %v1001_v46  ;;  %v1046_v40 = vmul.f32 %v2124_v50, %v1001_v46  ;;  %v921_v25 = vadd.f32 %v2118_v17, %v920_v38  ;;  %v1326_v0 = vpop.f32.mrb[7].mxu0 }
 0x288   : > { %v1011_v12 = vmax.f32 %v966_v59, 0.0 }
 0x289   : > { %v1002_v45 = vmax.f32 %v921_v25, 0.0  ;;  %1067 = vadd.xlane.f32.xlu1 %v1046_v40  ;;  %1085 = vadd.xlane.f32.xlu0 %v1055_v21  ;;  %v970_v60 = vpop.f32.mrb[6].mxu1 }
 0x28a   : > { %1030 = vst [vmem:[%s2126_s17 + $0x60] sm:$0xff] %v1011_v12  ;;  %v1056_v43 = vmul.f32 %v2124_v50, %v1011_v12  ;;  %v971_v11 = vadd.f32 %v2118_v17, %v970_v60  ;;  %v925_v44 = vpop.f32.mrb[8].mxu0  ;;  %v1356_v47 = vpop.f32.mrb[7].mxu1 }
 0x28b   : > { %1021 = vst [vmem:[%s2126_s17 + $0x18] sm:$0xff] %v1002_v45  ;;  %v1047_v53 = vmul.f32 %v2124_v50, %v1002_v45  ;;  %v926_v14 = vadd.f32 %v2118_v17, %v925_v44  ;;  %v1329_v29 = vpop.f32.mrb[9].mxu0 }
 0x28c   : > { %v1012_v61 = vmax.f32 %v971_v11, 0.0 }
 0x28d   : > { %v1003_v48 = vmax.f32 %v926_v14, 0.0  ;;  %1069 = vadd.xlane.f32.xlu0 %v1047_v53  ;;  %1087 = vadd.xlane.f32.xlu1 %v1056_v43  ;;  %v975_v13 = vpop.f32.mrb[8].mxu1 }
 0x28e   : > { %1031 = vst [vmem:[%s2126_s17 + $0x68] sm:$0xff] %v1012_v61  ;;  %v1057_v42 = vmul.f32 %v2124_v50, %v1012_v61  ;;  %v976_v49 = vadd.f32 %v2118_v17, %v975_v13  ;;  %v930_v32 = vpop.f32.mrb[10].mxu0  ;;  %v1359_v16 = vpop.f32.mrb[9].mxu1 }
 0x28f   : > { %1022 = vst [vmem:[%s2126_s17 + $0x20] sm:$0xff] %v1003_v48  ;;  %v1048_v51 = vmul.f32 %v2124_v50, %v1003_v48  ;;  %v931_v56 = vadd.f32 %v2118_v17, %v930_v32  ;;  %v1332_v15 = vpop.f32.mrb[11].mxu0 }
 0x290   : > { %v1013_v52 = vmax.f32 %v976_v49, 0.0 }
 0x291   : > { %v1004_v55 = vmax.f32 %v931_v56, 0.0  ;;  %1071 = vadd.xlane.f32.xlu1 %v1048_v51  ;;  %1089 = vadd.xlane.f32.xlu0 %v1057_v42  ;;  %v980_v33 = vpop.f32.mrb[10].mxu1 }
 0x292   : > { %1032 = vst [vmem:[%s2126_s17 + $0x70] sm:$0xff] %v1013_v52  ;;  %v1058_v39 = vmul.f32 %v2124_v50, %v1013_v52  ;;  %v981_v1 = vadd.f32 %v2118_v17, %v980_v33  ;;  %v935_v2 = vpop.f32.mrb[12].mxu0  ;;  %v1362_v62 = vpop.f32.mrb[11].mxu1 }
 0x293   : > { %1023 = vst [vmem:[%s2126_s17 + $0x28] sm:$0xff] %v1004_v55  ;;  %v1049_v30 = vmul.f32 %v2124_v50, %v1004_v55  ;;  %v936_v63 = vadd.f32 %v2118_v17, %v935_v2  ;;  %v1335_v54 = vpop.f32.mrb[13].mxu0 }
 0x294   : > { %v1014_v19 = vmax.f32 %v981_v1, 0.0 }
 0x295   : > { %v1005_v18 = vmax.f32 %v936_v63, 0.0  ;;  %1073 = vadd.xlane.f32.xlu0 %v1049_v30  ;;  %1091 = vadd.xlane.f32.xlu1 %v1058_v39  ;;  %v985_v35 = vpop.f32.mrb[12].mxu1 }
 0x296   : > { %1033 = vst [vmem:[%s2126_s17 + $0x78] sm:$0xff] %v1014_v19  ;;  %v1059_v4 = vmul.f32 %v2124_v50, %v1014_v19  ;;  %v986_v3 = vadd.f32 %v2118_v17, %v985_v35  ;;  %v940_v37 = vpop.f32.mrb[14].mxu0  ;;  %v1365_v20 = vpop.f32.mrb[13].mxu1 }
 0x297   : > { %1024 = vst [vmem:[%s2126_s17 + $0x30] sm:$0xff] %v1005_v18  ;;  %v1050_v24 = vmul.f32 %v2124_v50, %v1005_v18  ;;  %v941_v26 = vadd.f32 %v2118_v17, %v940_v37  ;;  %v1338_v57 = vpop.f32.mrb[15].mxu0 }
 0x298   : > { %v1015_v6 = vmax.f32 %v986_v3, 0.0 }
 0x299   : > { %v1006_v23 = vmax.f32 %v941_v26, 0.0  ;;  %1075 = vadd.xlane.f32.xlu1 %v1050_v24  ;;  %1093 = vadd.xlane.f32.xlu0 %v1059_v4  ;;  %v990_v5 = vpop.f32.mrb[14].mxu1 }
 0x29a   : > { %1034 = vst [vmem:[%s2126_s17 + $0x80] sm:$0xff] %v1015_v6  ;;  %v1060_v27 = vmul.f32 %v2124_v50, %v1015_v6  ;;  %v991_v28 = vadd.f32 %v2118_v17, %v990_v5  ;;  %v945_v31 = vpop.f32.mrb[16].mxu0  ;;  %v1368_v8 = vpop.f32.mrb[15].mxu1 }
 0x29b   : > { %1025 = vst [vmem:[%s2126_s17 + $0x38] sm:$0xff] %v1006_v23  ;;  %v1051_v34 = vmul.f32 %v2124_v50, %v1006_v23  ;;  %v946_v58 = vadd.f32 %v2118_v17, %v945_v31  ;;  %v1341_v22 = vpop.f32.mrb[17].mxu0 }
 0x29c   : > { %v1016_v7 = vmax.f32 %v991_v28, 0.0 }
 0x29d   : > { %v1007_v41 = vmax.f32 %v946_v58, 0.0  ;;  %1077 = vadd.xlane.f32.xlu0 %v1051_v34  ;;  %1095 = vadd.xlane.f32.xlu1 %v1060_v27 }
 0x29e   : > { %1035 = vst [vmem:[%s2126_s17 + $0x88] sm:$0xff] %v1016_v7  ;;  %v1061_v45 = vmul.f32 %v2124_v50, %v1016_v7 }
 0x29f   : > { %1026 = vst [vmem:[%s2126_s17 + $0x40] sm:$0xff] %v1007_v41  ;;  %v1052_v36 = vmul.f32 %v2124_v50, %v1007_v41 }
 0x2a1   : > { %1079 = vadd.xlane.f32.xlu1 %v1052_v36 }
 0x2a5   : > { %v995_v46 = vpop.f32.mrb[16].mxu1 }
 0x2a6   : > { %v996_v10 = vadd.f32 %v2118_v17, %v995_v46  ;;  %v950_v21 = vpop.f32.mrb[18].mxu0  ;;  %v1371_v59 = vpop.f32.mrb[17].mxu1 }
 0x2a7   : > { %v951_v38 = vadd.f32 %v2118_v17, %v950_v21  ;;  %v1344_v9 = vpop.f32.mrb[19].mxu0 }
 0x2a8   : > { %v1017_v40 = vmax.f32 %v996_v10, 0.0 }
 0x2a9   : > { %v1008_v25 = vmax.f32 %v951_v38, 0.0 }
 0x2aa   : > { %1036 = vst [vmem:[%s2126_s17 + $0x90] sm:$0xff] %v1017_v40  ;;  %v1062_v0 = vmul.f32 %v2124_v50, %v1017_v40 }
 0x2ab   : > { %1027 = vst [vmem:[%s2126_s17 + $0x48] sm:$0xff] %v1008_v25  ;;  %v1053_v12 = vmul.f32 %v2124_v50, %v1008_v25 }
 0x2ac   : > { %1099 = vadd.xlane.f32.xlu1 %v1062_v0 }
 0x2ad   : > { %1081 = vadd.xlane.f32.xlu0 %v1053_v12 }
 0x2b1   : > { %1097 = vadd.xlane.f32.xlu0 %v1061_v45 }
 0x2b2   : > { %1444 = shalt.err (!%p1441_p3)
}
 0x2b3   : > { %s1445_s30 = scalar_lea.hbm %s2189_s22, 2432  ;;  %s1449_s16 = scalar_lea.hbm %s2286_s5, 4864 }
 0x2b4   : > { %p1446_p4 = scmp.ne.s32.totalorder %s2189_s22, %s1445_s30  ;;  %p1450_p9 = scmp.lt.u32.totalorder %s2189_s22, %s2286_s5 }
 0x2b5   : > { %p1451_p10 = scmp.lt.u32.totalorder %s1449_s16, %s1445_s30  ;;  %p1453_p12 = scmp.lt.u32.totalorder %s1445_s30, %s2189_s22 }
 0x2b6   : > { %p1447_p7 = pnand %p1446_p4, %p1580_p5 }
 0x2b7   : > { %p1452_p11 = por %p1451_p10, %p1450_p9 }
 0x2b8   : > { %p1448_p8 = pneg %p1447_p7 }
 0x2b9   : > { %p1454_p13 = por %p1453_p12, %p1452_p11 }
 0x2bb   : > { %p1455_p0 = pnand %p1454_p13, %p1448_p8 }
 0x2bd   : > { %1458 = shalt.err (!%p1455_p0)
}
 0x2be   : > { %s1502_s20 = smov 128   ;;  %s1503_s21 = smov 8   ;;  %vm1122_vm9 = vcmask 7168  }
 0x2bf   : > { %1384 = dma.vmem_to_hbm [thread:$0]  (%p1580_p5), %s2191_s19, 2432, %s2189_s22, %s2195_s27, %s1502_s20, %s1502_s20, %s1503_s21  }
 0x2c0   : > { %s1101_s29 = sld [smem:[#allocation2]]  ;;  %s2224_s13 = scalar_lea.vmem %s2287_s6, %s1256_s11 }
 0x2c6   : > { %v1102_v17 = vstv %s1101_s29 }
 0x30d   : > { %v1064_v50 = vpop.xlane.xlu1 %1063 }
 0x30e   : > { %v1103_v60 = vadd.f32 %v1102_v17, %v1064_v50 }
 0x310   : > { %1123 = vst.msk [vmem:[%s2224_s13] sm:$0xff] %vm1122_vm9, %v1103_v60 }
 0x311   : > { %v1084_v43 = vpop.xlane.xlu1 %1083 }
 0x312   : > { %v1113_v11 = vadd.f32 %v1102_v17, %v1084_v43  ;;  %v1066_v44 = vpop.xlane.xlu0 %1065 }
 0x313   : > { %v1104_v47 = vadd.f32 %v1102_v17, %v1066_v44 }
 0x314   : > { %1133 = vst.msk [vmem:[%s2224_s13 + $0x50] sm:$0xff] %vm1122_vm9, %v1113_v11 }
 0x315   : > { %1124 = vst.msk [vmem:[%s2224_s13 + $0x8] sm:$0xff] %vm1122_vm9, %v1104_v47 }
 0x316   : > { %v1068_v53 = vpop.xlane.xlu1 %1067  ;;  %v1086_v14 = vpop.xlane.xlu0 %1085 }
 0x317   : > { %v1105_v29 = vadd.f32 %v1102_v17, %v1068_v53  ;;  %v1114_v61 = vadd.f32 %v1102_v17, %v1086_v14 }
 0x319   : > { %1125 = vst.msk [vmem:[%s2224_s13 + $0x10] sm:$0xff] %vm1122_vm9, %v1105_v29  ;;  %1134 = vst.msk [vmem:[%s2224_s13 + $0x58] sm:$0xff] %vm1122_vm9, %v1114_v61 }
 0x31a   : > { %v1088_v48 = vpop.xlane.xlu1 %1087  ;;  %v1070_v13 = vpop.xlane.xlu0 %1069 }
 0x31b   : > { %v1115_v42 = vadd.f32 %v1102_v17, %v1088_v48  ;;  %v1106_v49 = vadd.f32 %v1102_v17, %v1070_v13 }
 0x31d   : > { %1135 = vst.msk [vmem:[%s2224_s13 + $0x60] sm:$0xff] %vm1122_vm9, %v1115_v42  ;;  %1126 = vst.msk [vmem:[%s2224_s13 + $0x18] sm:$0xff] %vm1122_vm9, %v1106_v49 }
 0x31e   : > { %v1072_v32 = vpop.xlane.xlu1 %1071  ;;  %v1090_v16 = vpop.xlane.xlu0 %1089 }
 0x31f   : > { %v1107_v51 = vadd.f32 %v1102_v17, %v1072_v32  ;;  %v1116_v56 = vadd.f32 %v1102_v17, %v1090_v16 }
 0x321   : > { %1127 = vst.msk [vmem:[%s2224_s13 + $0x20] sm:$0xff] %vm1122_vm9, %v1107_v51  ;;  %1136 = vst.msk [vmem:[%s2224_s13 + $0x68] sm:$0xff] %vm1122_vm9, %v1116_v56 }
 0x322   : > { %v1092_v15 = vpop.xlane.xlu1 %1091  ;;  %v1074_v52 = vpop.xlane.xlu0 %1073 }
 0x323   : > { %v1117_v55 = vadd.f32 %v1102_v17, %v1092_v15  ;;  %v1108_v33 = vadd.f32 %v1102_v17, %v1074_v52 }
 0x325   : > { %1137 = vst.msk [vmem:[%s2224_s13 + $0x70] sm:$0xff] %vm1122_vm9, %v1117_v55  ;;  %1128 = vst.msk [vmem:[%s2224_s13 + $0x28] sm:$0xff] %vm1122_vm9, %v1108_v33 }
 0x326   : > { %v1076_v39 = vpop.xlane.xlu1 %1075  ;;  %v1094_v1 = vpop.xlane.xlu0 %1093 }
 0x327   : > { %v1109_v2 = vadd.f32 %v1102_v17, %v1076_v39  ;;  %v1118_v62 = vadd.f32 %v1102_v17, %v1094_v1 }
 0x329   : > { %1129 = vst.msk [vmem:[%s2224_s13 + $0x30] sm:$0xff] %vm1122_vm9, %v1109_v2  ;;  %1138 = vst.msk [vmem:[%s2224_s13 + $0x78] sm:$0xff] %vm1122_vm9, %v1118_v62 }
 0x32a   : > { %v1096_v30 = vpop.xlane.xlu1 %1095  ;;  %v1078_v63 = vpop.xlane.xlu0 %1077 }
 0x32b   : > { %v1119_v54 = vadd.f32 %v1102_v17, %v1096_v30  ;;  %v1110_v19 = vadd.f32 %v1102_v17, %v1078_v63 }
 0x32d   : > { %1139 = vst.msk [vmem:[%s2224_s13 + $0x80] sm:$0xff] %vm1122_vm9, %v1119_v54  ;;  %1130 = vst.msk [vmem:[%s2224_s13 + $0x38] sm:$0xff] %vm1122_vm9, %v1110_v19 }
 0x32e   : > { %v1080_v18 = vpop.xlane.xlu1 %1079 }
 0x32f   : > { %v1111_v35 = vadd.f32 %v1102_v17, %v1080_v18 }
 0x331   : > { %1131 = vst.msk [vmem:[%s2224_s13 + $0x40] sm:$0xff] %vm1122_vm9, %v1111_v35 }
 0x339   : > { %v1100_v4 = vpop.xlane.xlu1 %1099 }
 0x33a   : > { %v1121_v3 = vadd.f32 %v1102_v17, %v1100_v4  ;;  %v1082_v37 = vpop.xlane.xlu0 %1081 }
 0x33b   : > { %v1112_v20 = vadd.f32 %v1102_v17, %v1082_v37 }
 0x33c   : > { %1141 = vst.msk [vmem:[%s2224_s13 + $0x90] sm:$0xff] %vm1122_vm9, %v1121_v3 }
 0x33d   : > { %1132 = vst.msk [vmem:[%s2224_s13 + $0x48] sm:$0xff] %vm1122_vm9, %v1112_v20 }
 0x33e   : > { %v1098_v24 = vpop.xlane.xlu0 %1097 }
 0x33f   : > { %v1120_v26 = vadd.f32 %v1102_v17, %v1098_v24 }
 0x341   : > { %1140 = vst.msk [vmem:[%s2224_s13 + $0x88] sm:$0xff] %vm1122_vm9, %v1120_v26 }
 0x342 PF: > { %p1390_p5 = scmp.ge.s32.totalorder %s1493_s26, 2  ;;  %s1180_s8 = sand.u32 1, %s1481_s23  }
 0x343   : > { %s1181_s10 = scalar_lea.sflag [#allocation4], %s1180_s8 }
 0x344   : > { %p1387_p1 = pnand %p1390_p5, %p1584_p6 }
 0x346   : > { %1476 = dma.done.wait (!%p1387_p1), %s1181_s10, 2432  }
 0x347   : > { %1478 = vsyncadd (!%p1387_p1), %s1181_s10, 4294964864  ;;  %p18_p2 = scmp.ge.s32.totalorder %s1567_s28, 4   ;;  %s2290_s23 = smov %s1485_s24 }
 0x348   : > { %s2291_s24 = smov %s1489_s25  ;;  %s2292_s25 = smov %s1578_s7 }
 0x349   : > { %s2293_s26 = smov %s1567_s28  ;;  %20 = sbr.rel (!%p18_p2) target bundleno = 5 (0x5), region = 87 }
 0x350   :  { %1194 = vsyncpa [#allocation4], 1 }
 0x351   :  { %1196 = vsyncpa [#allocation4 + $0x1], 1 }

</bundles_post_ra>
